<compile_context>
chip_gen: v7x
topology: tpu7x:2x2x1
jax: 0.10.0
libtpu: 0.0.40
codegen_flags: <defaults>
</compile_context>

<pallas_src>
import re
import numpy as np
import jax
import jax.numpy as jnp
from jax.experimental import pallas as pl
from jax.experimental.pallas import tpu as pltpu

# Constants from the PyTorch module.
OFFSET_N = float(1.0 / (1.0 + np.exp(0.01)))    # sigmoid(-0.01)
OFFSET_P = float(1.0 / (1.0 + np.exp(-0.01)))   # sigmoid(+0.01)

LANE = 128                 # lane-dense last dim -> unmasked vector stores
RAGGED_SPLIT_MIN = 1 << 20  # below this many elements, just pad to 128


def _tpu_generation():
    """Best-effort TPU generation from device_kind; conservative fallback."""
    try:
        kind = jax.devices()[0].device_kind.lower()
    except Exception:
        return 5
    m = re.search(r"v?(\d+)", kind.replace("tpu", ""))
    if m:
        return int(m.group(1))
    return 5


def _default_tile_rows(gen):
    if gen >= 7:
        return 16384   # 8 MiB f32 tile; 32 MiB dbl-buffered in+out (48 MiB limit)
    if gen == 6:
        return 8192    # 4 MiB f32 tile; 16 MiB total, within 32 MiB default
    return 4096        # 2 MiB f32 tile; 8 MiB total, within v5e 16 MiB default


def _pick_block_rows(rows, tile_rows, gen):
    """Block rows: full tiles when large; on v7x split small inputs across 2 TCs."""
    if rows > tile_rows:
        return tile_rows
    if gen >= 7 and rows >= 2048:
        # >= 2 grid steps so the "parallel" axis can use both TensorCores.
        half = -(-rows // 2)
        return min(tile_rows, ((half + 7) // 8) * 8)
    return rows  # single full-extent block (always legal regardless of alignment)


def _make_kernel(compute_dtype):
    def kernel(x_ref, o_ref):
        x = x_ref[...].astype(compute_dtype)
        # Clamp form of I_Sigmoid: exact linear branches, 2-term Taylor of
        # sigmoid for |x| <= 0.01 (abs deviation < 2.1e-8 vs exact sigmoid).
        c = jnp.minimum(jnp.maximum(x, -0.01), 0.01)
        y = (x - c) + (0.5 + 0.25 * c)
        o_ref[...] = y.astype(o_ref.dtype)
    return kernel


def _run_aligned(flat_aligned, compute_dtype, tile_rows, gen):
    """Run the kernel on a flat, 128-aligned 1-D array; returns flat output."""
    rows = flat_aligned.shape[0] // LANE
    x2d = flat_aligned.reshape(rows, LANE)
    block_rows = _pick_block_rows(rows, tile_rows, gen)
    grid = (pl.cdiv(rows, block_rows),)

    cparams = dict(dimension_semantics=("parallel",))
    if gen >= 7:
        # 8 MiB tiles * (in + out) * double buffering exceed the 32 MiB default
        # scoped VMEM on v7x; stay well under the 64 MiB physical VMEM per TC.
        cparams["vmem_limit_bytes"] = 48 << 20

    out = pl.pallas_call(
        _make_kernel(compute_dtype),
        out_shape=jax.ShapeDtypeStruct((rows, LANE), flat_aligned.dtype),
        grid_spec=pltpu.PrefetchScalarGridSpec(
            num_scalar_prefetch=0,
            grid=grid,
            in_specs=[pl.BlockSpec((block_rows, LANE), lambda i: (i, 0))],
            out_specs=pl.BlockSpec((block_rows, LANE), lambda i: (i, 0)),
        ),
        compiler_params=pltpu.CompilerParams(**cparams),
    )(x2d)
    return out.reshape(-1)


def i_sigmoid_ref(x):
    """Pure-JAX reference (exact PyTorch semantics); also used for ragged tails."""
    xf = x.astype(jnp.float32)
    y0 = jax.nn.sigmoid(xf)
    yn = (xf + 0.01) + OFFSET_N
    yp = (xf - 0.01) + OFFSET_P
    y = jnp.where(xf < -0.01, yn, y0)
    y = jnp.where(xf > 0.01, yp, y)
    return y.astype(x.dtype)


def i_sigmoid(x, *, tile_rows=None):
    """Elementwise I_Sigmoid. Any shape; preserves shape and dtype."""
    orig_shape = x.shape
    orig_dtype = x.dtype
    n = int(np.prod(orig_shape)) if orig_shape else 1
    if n == 0:
        return x

    gen = _tpu_generation()
    if tile_rows is None:
        tile_rows = _default_tile_rows(gen)

    # bf16 math on chips with a bf16 VPU (v6e+); f32 upcast otherwise.
    if orig_dtype == jnp.bfloat16 and gen >= 6:
        compute_dtype = jnp.bfloat16
    else:
        compute_dtype = jnp.float32

    flat = x.reshape(-1)
    rem = n % LANE
    if rem == 0:
        out_flat = _run_aligned(flat, compute_dtype, tile_rows, gen)
    elif n < RAGGED_SPLIT_MIN:
        # Small ragged input: the pad/slice round trip is negligible.
        padded = jnp.pad(flat, (0, LANE - rem))
        out_flat = _run_aligned(padded, compute_dtype, tile_rows, gen)[:n]
    else:
        # Large ragged input: kernel on the 128-aligned prefix, tiny tail in jnp
        # (avoids a full-array pad + slice-back, i.e. ~2x extra HBM traffic).
        n_main = n - rem
        out_main = _run_aligned(flat[:n_main], compute_dtype, tile_rows, gen)
        out_tail = i_sigmoid_ref(flat[n_main:])
        out_flat = jnp.concatenate([out_main, out_tail])
    return out_flat.reshape(orig_shape)


if __name__ == "__main__":
    key = jax.random.PRNGKey(0)
    k1, k2, k3, k4 = jax.random.split(key, 4)

    # 1) Main NCHW case (lane-aligned, single block).
    x = jax.random.normal(k1, (2, 4, 16, 16), dtype=jnp.float32)
    y = i_sigmoid(x)
    jax.block_until_ready(y)
    assert y.shape == x.shape and y.dtype == x.dtype
    np.testing.assert_allclose(np.asarray(y), np.asarray(i_sigmoid_ref(x)),
                               rtol=1e-6, atol=1e-6)

    # 2) Ragged size -> cheap pad-to-128 path.
    x2 = jax.random.normal(k2, (3, 5, 7), dtype=jnp.float32)
    y2 = i_sigmoid(x2)
    jax.block_until_ready(y2)
    np.testing.assert_allclose(np.asarray(y2), np.asarray(i_sigmoid_ref(x2)),
                               rtol=1e-6, atol=1e-6)

    # 3) Multi-step grid path (small tile override -> pipelined partial blocks).
    x3 = jax.random.normal(k3, (2, 4, 32, 32), dtype=jnp.float32)
    y3 = i_sigmoid(x3, tile_rows=8)
    jax.block_until_ready(y3)
    np.testing.assert_allclose(np.asarray(y3), np.asarray(i_sigmoid_ref(x3)),
                               rtol=1e-6, atol=1e-6)

    # 4) bf16 path (native bf16 math on v6e/v7x, f32 upcast on older chips).
    x4 = jax.random.normal(k4, (2, 4, 16, 16), dtype=jnp.bfloat16)
    y4 = i_sigmoid(x4)
    jax.block_until_ready(y4)
    np.testing.assert_allclose(np.asarray(y4.astype(jnp.float32)),
                               np.asarray(i_sigmoid_ref(x4).astype(jnp.float32)),
                               rtol=2e-2, atol=2e-2)

    print("KERNEL_OK")
</pallas_src>

<mosaic_0001>
module attributes {stable_mosaic.version = 11 : i64} {
  func.func @kernel(%arg0: i32, %arg1: memref<16x128xf32, #tpu.memory_space<vmem>>, %arg2: memref<16x128xf32, #tpu.memory_space<vmem>>) attributes {dimension_semantics = [#tpu.dimension_semantics<parallel>], iteration_bounds = array<i64: 1>, scalar_prefetch = 0 : i64, scratch_operands = 0 : i64, tpu.core_type = #tpu.core_type<tc>, window_params = [{transform_indices = @transform_0, window_bounds = array<i64: 16, 128>}, {transform_indices = @transform_1, window_bounds = array<i64: 16, 128>}]} {
    %c0 = arith.constant 0 : index
    %c0_0 = arith.constant 0 : index
    %0 = vector.load %arg1[%c0, %c0_0] : memref<16x128xf32, #tpu.memory_space<vmem>>, vector<16x128xf32>
    %cst = arith.constant -0.00999999977 : f32
    %1 = vector.broadcast %cst : f32 to vector<16x128xf32>
    %2 = arith.maximumf %0, %1 : vector<16x128xf32>
    %cst_1 = arith.constant 0.00999999977 : f32
    %3 = vector.broadcast %cst_1 : f32 to vector<16x128xf32>
    %4 = arith.minimumf %2, %3 : vector<16x128xf32>
    %5 = arith.subf %0, %4 : vector<16x128xf32>
    %cst_2 = arith.constant 2.500000e-01 : f32
    %6 = vector.broadcast %cst_2 : f32 to vector<16x128xf32>
    %7 = arith.mulf %6, %4 : vector<16x128xf32>
    %cst_3 = arith.constant 5.000000e-01 : f32
    %8 = vector.broadcast %cst_3 : f32 to vector<16x128xf32>
    %9 = arith.addf %8, %7 : vector<16x128xf32>
    %10 = arith.addf %5, %9 : vector<16x128xf32>
    %c0_4 = arith.constant 0 : index
    %c0_5 = arith.constant 0 : index
    %11 = vector.load %arg2[%c0_4, %c0_5] : memref<16x128xf32, #tpu.memory_space<vmem>>, vector<16x128xf32>
    tpu.vector_store %arg2[%c0_4, %c0_5], %10 {strides = array<i32>} : memref<16x128xf32, #tpu.memory_space<vmem>>, vector<16x128xf32>,
    return
  }
  func.func @transform_0(%arg0: i32) -> (i32, i32) {
    %c0_i32 = arith.constant 0 : i32
    %c0_i32_0 = arith.constant 0 : i32
    return %arg0, %c0_i32 : i32, i32
  }
  func.func @transform_1(%arg0: i32) -> (i32, i32) {
    %c0_i32 = arith.constant 0 : i32
    %c0_i32_0 = arith.constant 0 : i32
    return %arg0, %c0_i32 : i32, i32
  }
}

</mosaic_0001>

<bundles_post_ra>
// kernel: tpu_custom_call.1
= control target key start
LH: loop header
LB: loop body
LE: loop exit
PB: predicated region body
PF: predicated region fallthrough
CT: control target
= control target key end

     0   :  { %6 = vsyncpa [#allocation3], 0  ;;  %s154_s0 = inlined_call_operand.hbm [shape: f32[16,128], index: 0, kind: input, shape index: {}]   ;;  %s155_s1 = inlined_call_operand.hbm [shape: f32[16,128], index: 1, kind: output, shape index: {}]  }
   0x1   :  { %7 = vsyncpa [#allocation4], 0  ;;  %s110_s6 = smov [#allocation2]   ;;  %s62_s10 = scalar_lea.hbm %s154_s0, 256 }
   0x2   :  { %s13_s7 = sshll.u32 %s110_s6, 4  ;;  %p63_p0 = scmp.ne.s32.totalorder %s154_s0, %s62_s10  ;;  %s14_s7 = int_to_ptr.vmem [resolvable:$true] %s13_s7 }
   0x3   :  { %p66_p1 = scmp.lt.u32.totalorder %s62_s10, %s154_s0 }
   0x5   :  { %p68_p2 = pnand %p66_p1, %p63_p0 }
   0x7   :  { %71 = shalt.err (!%p68_p2)
}
   0x8   :  { %s72_s15 = scalar_lea.vmem %s14_s7, 256  ;;  %p77_p4 = scmp.lt.s32.totalorder %s14_s7, %s14_s7 }
   0x9   :  { %p73_p3 = scmp.ne.s32.totalorder %s14_s7, %s72_s15  ;;  %p78_p5 = scmp.lt.s32.totalorder %s72_s15, %s72_s15 }
   0xb   :  { %p79_p6 = por %p78_p5, %p77_p4 }
   0xd   :  { %p80_p7 = pnand %p79_p6, %p73_p3 }
   0xf   :  { %83 = shalt.err (!%p80_p7)
}
  0x10   :  { %s111_s16 = smov 128   ;;  %s112_s17 = smov 8  }
  0x11   :  { %19 = dma.hbm_to_vmem [thread:$0]  %s154_s0, 256, %s14_s7, [#allocation3], %s111_s16, %s111_s16, %s112_s17  }
  0x12   :  { %106 = dma.done.wait [#allocation3], 256  }
  0x13   :  { %107 = vsyncadd [#allocation3], 4294967040  ;;  %v23_v0 = vld [vmem:[#allocation2] sm:$0xff]  ;;  %v24_v1 = vld [vmem:[#allocation2 + $0x8] sm:$0xff]  ;;  %s113_s20 = smov [#allocation5]  }
  0x14   :  { %v56_v2 = vclamps-f32 %v23_v0, 0.01  ;;  %v57_v3 = vclamps-f32 %v24_v1, 0.01  ;;  %s44_s21 = sshll.u32 %s113_s20, 4  ;;  %s45_s21 = int_to_ptr.vmem [resolvable:$true] %s44_s21 }
  0x15   :  { %s84_s0 = scalar_lea.vmem %s45_s21, 256  ;;  %p89_p9 = scmp.lt.s32.totalorder %s45_s21, %s45_s21 }
  0x16   :  { %v29_v4 = vsub.f32 %v23_v0, %v56_v2  ;;  %v31_v5 = vmul.f32 0.25, %v56_v2  ;;  %v30_v6 = vsub.f32 %v24_v1, %v57_v3  ;;  %v32_v7 = vmul.f32 0.25, %v57_v3  ;;  %p85_p8 = scmp.ne.s32.totalorder %s45_s21, %s84_s0  ;;  %p90_p10 = scmp.lt.s32.totalorder %s84_s0, %s84_s0 }
  0x18   :  { %v33_v8 = vadd.f32 0.5, %v31_v5  ;;  %v34_v9 = vadd.f32 0.5, %v32_v7  ;;  %p91_p11 = por %p90_p10, %p89_p9 }
  0x1a   :  { %v35_v10 = vadd.f32 %v33_v8, %v29_v4  ;;  %v36_v11 = vadd.f32 %v34_v9, %v30_v6  ;;  %p92_p12 = pnand %p91_p11, %p85_p8 }
  0x1c   :  { %37 = vst [vmem:[#allocation5] sm:$0xff] %v35_v10  ;;  %38 = vst [vmem:[#allocation5 + $0x8] sm:$0xff] %v36_v11 }
  0x1d   :  { %95 = shalt.err (!%p92_p12)
}
  0x1e   :  { %s96_s24 = scalar_lea.hbm %s155_s1, 256 }
  0x1f   :  { %p97_p13 = scmp.ne.s32.totalorder %s155_s1, %s96_s24  ;;  %p100_p0 = scmp.lt.u32.totalorder %s96_s24, %s155_s1 }
  0x21   :  { %p102_p1 = pnand %p100_p0, %p97_p13 }
  0x23   :  { %105 = shalt.err (!%p102_p1)
}
  0x24   :  { %50 = dma.vmem_to_hbm [thread:$0]  %s45_s21, 256, %s155_s1, [#allocation4], %s111_s16, %s111_s16, %s112_s17  }
  0x25   :  { %108 = dma.done.wait [#allocation4], 256  }
  0x26   :  { %109 = vsyncadd [#allocation4], 4294967040 }
  0x27   :  { %54 = vsyncpa [#allocation3], 1 }
  0x28   :  { %55 = vsyncpa [#allocation4], 1 }

</bundles_post_ra>
